<compile_context>
chip_gen: v6e
topology: v6e:2x2x1
jax: 0.10.0
libtpu: 0.0.40
codegen_flags: <defaults>
</compile_context>

<pallas_src>
import functools

import jax
import jax.numpy as jnp
from jax.experimental import pallas as pl
from jax.experimental.pallas import tpu as pltpu

KH = KW = 4
PAD = 1
EPS = 1e-5
NEG_SLOPE = 0.2


def _round_up(x, m):
    return (x + m - 1) // m * m


def _ceil_div(x, m):
    return (x + m - 1) // m


# ---------------------------------------------------------------------------
# Pass 1: fused patch-extraction conv (A shifted MXU matmuls, f32 accumulation)
# + per-tile partial BatchNorm statistics.  y is emitted in bf16.
# ---------------------------------------------------------------------------
def conv_stats_kernel(xs_ref, w_ref, y_ref, stats_ref, *,
                      n_shifts, ow_pad, tr, valid_rows):
    base = pl.program_id(1) * tr
    c_pad = w_ref.shape[-1]
    acc = jnp.zeros((tr, c_pad), jnp.float32)
    for a in range(n_shifts):                     # static, <= 4 iterations
        start = pl.multiple_of(base + a * ow_pad, 16)
        xsl = xs_ref[0, pl.ds(start, tr), :]      # (tr, F) bf16, 16-aligned
        acc = acc + jnp.dot(xsl, w_ref[a], preferred_element_type=jnp.float32)
    y_ref[0] = acc.astype(y_ref.dtype)

    # Partial per-channel stats.  Rows past the true output range read halo
    # rows and hold garbage -> masked.  Zero-padded OW columns give y == 0
    # exactly, so they are harmless (the wrapper divides by the true count).
    row = base + jax.lax.broadcasted_iota(jnp.int32, (tr, 1), 0)
    yv = jnp.where(row < valid_rows, acc, 0.0)
    stats_ref[0, 0, 0:1, :] = jnp.sum(yv, axis=0, keepdims=True)
    stats_ref[0, 0, 1:2, :] = jnp.sum(yv * yv, axis=0, keepdims=True)


# ---------------------------------------------------------------------------
# Pass 2: folded BatchNorm (single FMA per element) + LeakyReLU(0.2).
# ---------------------------------------------------------------------------
def bn_act_kernel(y_ref, scale_ref, shift_ref, o_ref):
    y = y_ref[...].astype(jnp.float32)
    out = y * scale_ref[...] + shift_ref[...]
    o_ref[...] = jnp.where(out > 0, out, NEG_SLOPE * out)


@functools.partial(jax.jit, static_argnames=("stride",))
def cnn_block_forward(x_nchw, conv_w, gamma, beta, stride):
    """x_nchw: (N, Cin, H, W) f32; conv_w: (Cout, Cin, 4, 4) PyTorch OIHW."""
    n, c_in, h, w = x_nchw.shape
    c_out = conv_w.shape[0]
    s = stride
    a_sh = _ceil_div(KH, s)                   # number of row-shift matmuls
    oh = (h + 2 * PAD - KH) // s + 1
    ow = (w + 2 * PAD - KW) // s + 1
    hp = h + 2 * PAD
    hs = _ceil_div(hp, s)
    ow_pad = _round_up(ow, 16)                # keep bf16 row offsets tile-aligned
    f = s * KW * c_in                         # contraction dim of each shift matmul
    c_pad = _round_up(c_out, 128)

    # Row tiling (pass 2 gets a larger tile -- it has no contraction dim).
    valid_rows = oh * ow_pad
    tr1 = min(512, _round_up(valid_rows, 16))
    tr2 = tr1 * max(1, min(2048 // tr1, _ceil_div(valid_rows, tr1)))
    r_out = _round_up(valid_rows, tr2)
    n1 = r_out // tr1
    n2 = r_out // tr2
    r_in = _round_up(max(hs * ow_pad, r_out + (a_sh - 1) * ow_pad), 16)

    # ---- cheap wrapper relayout: reflect pad (NHWC, bf16), column im2col, ---
    # ---- row space-to-depth (~KW/stride x the bf16 input, not 16x). --------
    x_nhwc = jnp.transpose(x_nchw, (0, 2, 3, 1)).astype(jnp.bfloat16)
    xp = jnp.pad(x_nhwc, ((0, 0), (PAD, PAD), (PAD, PAD), (0, 0)), mode="reflect")
    if hs * s > hp:                           # zero rows, never read by valid outputs
        xp = jnp.pad(xp, ((0, 0), (0, hs * s - hp), (0, 0), (0, 0)))
    cols = [xp[:, :, kw:kw + s * (ow - 1) + 1:s, :] for kw in range(KW)]
    xw = jnp.stack(cols, axis=3)              # (N, hs*s, OW, KW, Cin)
    xw = xw.reshape(n, hs, s, ow, KW, c_in)
    xw = jnp.transpose(xw, (0, 1, 3, 2, 4, 5))  # (N, hs, OW, s, KW, Cin)
    xs = xw.reshape(n, hs, ow, f)
    xs = jnp.pad(xs, ((0, 0), (0, 0), (0, ow_pad - ow), (0, 0)))
    xs = xs.reshape(n, hs * ow_pad, f)
    xs = jnp.pad(xs, ((0, 0), (0, r_in - hs * ow_pad), (0, 0)))

    # ---- weights: OIHW -> per-shift (F, Cout_pad) matrices ------------------
    kh_pad = a_sh * s
    w_p = jnp.pad(conv_w, ((0, 0), (0, 0), (0, kh_pad - KH), (0, 0)))
    w6 = w_p.reshape(c_out, c_in, a_sh, s, KW)
    w6 = jnp.transpose(w6, (2, 3, 4, 1, 0))   # (A, s, KW, Cin, Cout)
    w2 = w6.reshape(a_sh, f, c_out)
    w2 = jnp.pad(w2, ((0, 0), (0, 0), (0, c_pad - c_out))).astype(jnp.bfloat16)

    # ---- VMEM budgets (v7x: 64 MiB physical, v5e: 16 MiB default scoped) ----
    def blk(rows, colz, itemsize):
        return _round_up(rows, 16) * _round_up(colz, 128) * itemsize

    vmem1 = (2 * blk(r_in, f, 2) + 2 * a_sh * blk(f, c_pad, 2)
             + 2 * blk(tr1, c_pad, 2) + 2 * blk(8, c_pad, 4) + (4 << 20))
    vmem1 = int(min(max(vmem1, 16 << 20), 64 << 20))
    vmem2 = (2 * blk(tr2, c_pad, 2) + 2 * blk(tr2, c_pad, 4)
             + 4 * blk(1, c_pad, 4) + (4 << 20))
    vmem2 = int(min(max(vmem2, 16 << 20), 64 << 20))

    # ---- pass 1: fused conv + partial per-channel statistics ----------------
    y, stats = pl.pallas_call(
        functools.partial(conv_stats_kernel, n_shifts=a_sh, ow_pad=ow_pad,
                          tr=tr1, valid_rows=valid_rows),
        out_shape=(
            jax.ShapeDtypeStruct((n, r_out, c_pad), jnp.bfloat16),
            jax.ShapeDtypeStruct((n, n1, 8, c_pad), jnp.float32),
        ),
        grid=(n, n1),
        in_specs=[
            pl.BlockSpec((1, r_in, f), lambda i, j: (i, 0, 0)),       # per-image, resident over j
            pl.BlockSpec((a_sh, f, c_pad), lambda i, j: (0, 0, 0)),   # weights, VMEM-resident
        ],
        out_specs=(
            pl.BlockSpec((1, tr1, c_pad), lambda i, j: (i, j, 0)),
            pl.BlockSpec((1, 1, 8, c_pad), lambda i, j: (i, j, 0, 0)),
        ),
        compiler_params=pltpu.CompilerParams(
            dimension_semantics=("parallel", "parallel"),
            vmem_limit_bytes=vmem1,
        ),
    )(xs, w2)

    # ---- merge partial stats; fold BN affine into one scale/shift per chan --
    cnt = n * oh * ow
    ssum = jnp.sum(stats[:, :, 0, :], axis=(0, 1))
    ssq = jnp.sum(stats[:, :, 1, :], axis=(0, 1))
    mean = ssum / cnt
    var = jnp.maximum(ssq / cnt - mean * mean, 0.0)      # clamp (review note)
    inv_std = jax.lax.rsqrt(var + EPS)
    gamma_p = jnp.pad(gamma.astype(jnp.float32), (0, c_pad - c_out))  # pad with 0
    beta_p = jnp.pad(beta.astype(jnp.float32), (0, c_pad - c_out))
    scale = (gamma_p * inv_std).reshape(1, c_pad)
    shift = (beta_p - mean * gamma_p * inv_std).reshape(1, c_pad)

    # ---- pass 2: y * scale + shift, LeakyReLU (bigger row tiles) ------------
    out_flat = pl.pallas_call(
        bn_act_kernel,
        out_shape=jax.ShapeDtypeStruct((n, r_out, c_pad), jnp.float32),
        grid=(n, n2),
        in_specs=[
            pl.BlockSpec((1, tr2, c_pad), lambda i, j: (i, j, 0)),
            pl.BlockSpec((1, c_pad), lambda i, j: (0, 0)),            # VMEM-resident
            pl.BlockSpec((1, c_pad), lambda i, j: (0, 0)),            # VMEM-resident
        ],
        out_specs=pl.BlockSpec((1, tr2, c_pad), lambda i, j: (i, j, 0)),
        compiler_params=pltpu.CompilerParams(
            dimension_semantics=("parallel", "parallel"),
            vmem_limit_bytes=vmem2,
        ),
    )(y, scale, shift)

    # crop row/column/channel padding, then NHWC -> NCHW (still an XLA relayout).
    out = out_flat[:, :valid_rows, :c_out].reshape(n, oh, ow_pad, c_out)
    out = out[:, :, :ow, :]
    return jnp.transpose(out, (0, 3, 1, 2))


def ref_forward(x, conv_w, gamma, beta, stride, cast_bf16=False):
    """Pure-JAX reference mirroring the PyTorch module (training-mode BN)."""
    if cast_bf16:   # same input rounding as the bf16 kernel path
        x = x.astype(jnp.bfloat16).astype(jnp.float32)
        conv_w = conv_w.astype(jnp.bfloat16).astype(jnp.float32)
    xp = jnp.pad(x, ((0, 0), (0, 0), (PAD, PAD), (PAD, PAD)), mode="reflect")
    y = jax.lax.conv_general_dilated(
        xp, conv_w, (stride, stride), "VALID",
        dimension_numbers=("NCHW", "OIHW", "NCHW"),
        precision=jax.lax.Precision.HIGHEST,
    )
    if cast_bf16:   # kernel keeps the conv output in bf16 between the passes
        y = y.astype(jnp.bfloat16).astype(jnp.float32)
    mean = y.mean(axis=(0, 2, 3), keepdims=True)
    var = y.var(axis=(0, 2, 3), keepdims=True)
    yn = (y - mean) * jax.lax.rsqrt(var + EPS)
    out = yn * gamma.reshape(1, -1, 1, 1) + beta.reshape(1, -1, 1, 1)
    return jnp.where(out > 0, out, NEG_SLOPE * out)


if __name__ == "__main__":
    key = jax.random.PRNGKey(0)
    k_x, k_w = jax.random.split(key)

    N, C_IN, H, W = 2, 4, 16, 16
    C_OUT, STRIDE = 8, 2

    x = jax.random.normal(k_x, (N, C_IN, H, W), dtype=jnp.float32)
    conv_w = 0.1 * jax.random.normal(k_w, (C_OUT, C_IN, KH, KW), dtype=jnp.float32)
    gamma = jnp.ones((C_OUT,), dtype=jnp.float32)   # PyTorch BN default init
    beta = jnp.zeros((C_OUT,), dtype=jnp.float32)

    out = cnn_block_forward(x, conv_w, gamma, beta, stride=STRIDE)
    out = jax.block_until_ready(out)
    assert out.shape == (N, C_OUT, H // STRIDE, W // STRIDE), out.shape

    # Check vs a reference with identical bf16 rounding of x / w / y
    # (remaining differences: accumulation order + stats from f32 acc).
    ref_b = ref_forward(x, conv_w, gamma, beta, STRIDE, cast_bf16=True)
    err_b = float(jnp.max(jnp.abs(out - ref_b)))
    assert err_b < 2e-2, err_b

    # Coarse sanity check vs the exact-f32 PyTorch-semantics reference
    # (difference is only the intentional bf16 activation/weight precision).
    ref_f = ref_forward(x, conv_w, gamma, beta, STRIDE, cast_bf16=False)
    err_f = float(jnp.max(jnp.abs(out - ref_f)))
    assert err_f < 1e-1, err_f

    print("KERNEL_OK")
</pallas_src>

<mosaic_0001>
module attributes {stable_mosaic.version = 11 : i64} {
  func.func @bn_act_kernel(%arg0: i32, %arg1: i32, %arg2: memref<1x128x128xbf16, #tpu.memory_space<vmem>>, %arg3: memref<1x128xf32, #tpu.memory_space<vmem>>, %arg4: memref<1x128xf32, #tpu.memory_space<vmem>>, %arg5: memref<1x128x128xf32, #tpu.memory_space<vmem>>) attributes {dimension_semantics = [#tpu.dimension_semantics<parallel>, #tpu.dimension_semantics<parallel>], iteration_bounds = array<i64: 2, 1>, scalar_prefetch = 0 : i64, scratch_operands = 0 : i64, tpu.core_type = #tpu.core_type<tc>, window_params = [{transform_indices = @transform_0, window_bounds = array<i64: 1, 128, 128>}, {pipeline_mode = #tpu.pipeline_mode<synchronous>, transform_indices = @transform_1, window_bounds = array<i64: 1, 128>}, {pipeline_mode = #tpu.pipeline_mode<synchronous>, transform_indices = @transform_2, window_bounds = array<i64: 1, 128>}, {transform_indices = @transform_3, window_bounds = array<i64: 1, 128, 128>}]} {
    %c0 = arith.constant 0 : index
    %c0_0 = arith.constant 0 : index
    %c0_1 = arith.constant 0 : index
    %0 = vector.load %arg2[%c0, %c0_0, %c0_1] : memref<1x128x128xbf16, #tpu.memory_space<vmem>>, vector<1x128x128xbf16>
    %1 = arith.extf %0 : vector<1x128x128xbf16> to vector<1x128x128xf32>
    %c0_2 = arith.constant 0 : index
    %c0_3 = arith.constant 0 : index
    %2 = vector.load %arg3[%c0_2, %c0_3] : memref<1x128xf32, #tpu.memory_space<vmem>>, vector<1x128xf32>
    %3 = vector.shape_cast %2 : vector<1x128xf32> to vector<1x1x128xf32>
    %4 = vector.broadcast %3 : vector<1x1x128xf32> to vector<1x128x128xf32>
    %5 = arith.mulf %1, %4 : vector<1x128x128xf32>
    %c0_4 = arith.constant 0 : index
    %c0_5 = arith.constant 0 : index
    %6 = vector.load %arg4[%c0_4, %c0_5] : memref<1x128xf32, #tpu.memory_space<vmem>>, vector<1x128xf32>
    %7 = vector.shape_cast %6 : vector<1x128xf32> to vector<1x1x128xf32>
    %8 = vector.broadcast %7 : vector<1x1x128xf32> to vector<1x128x128xf32>
    %9 = arith.addf %5, %8 : vector<1x128x128xf32>
    %cst = arith.constant 0.000000e+00 : f32
    %10 = vector.broadcast %cst : f32 to vector<1x128x128xf32>
    %11 = arith.cmpf ogt, %9, %10 : vector<1x128x128xf32>
    %cst_6 = arith.constant 2.000000e-01 : f32
    %12 = vector.broadcast %cst_6 : f32 to vector<1x128x128xf32>
    %13 = arith.mulf %12, %9 : vector<1x128x128xf32>
    %14 = arith.select %11, %9, %13 : vector<1x128x128xi1>, vector<1x128x128xf32>
    %c0_7 = arith.constant 0 : index
    %c0_8 = arith.constant 0 : index
    %c0_9 = arith.constant 0 : index
    %15 = vector.load %arg5[%c0_7, %c0_8, %c0_9] : memref<1x128x128xf32, #tpu.memory_space<vmem>>, vector<1x128x128xf32>
    tpu.vector_store %arg5[%c0_7, %c0_8, %c0_9], %14 {strides = array<i32>} : memref<1x128x128xf32, #tpu.memory_space<vmem>>, vector<1x128x128xf32>,
    return
  }
  func.func @transform_0(%arg0: i32, %arg1: i32) -> (i32, i32, i32) {
    %c0_i32 = arith.constant 0 : i32
    %c0_i32_0 = arith.constant 0 : i32
    return %arg0, %arg1, %c0_i32 : i32, i32, i32
  }
  func.func @transform_1(%arg0: i32, %arg1: i32) -> (i32, i32) {
    %c0_i32 = arith.constant 0 : i32
    %c0_i32_0 = arith.constant 0 : i32
    %c0_i32_1 = arith.constant 0 : i32
    return %c0_i32, %c0_i32_0 : i32, i32
  }
  func.func @transform_2(%arg0: i32, %arg1: i32) -> (i32, i32) {
    %c0_i32 = arith.constant 0 : i32
    %c0_i32_0 = arith.constant 0 : i32
    %c0_i32_1 = arith.constant 0 : i32
    return %c0_i32, %c0_i32_0 : i32, i32
  }
  func.func @transform_3(%arg0: i32, %arg1: i32) -> (i32, i32, i32) {
    %c0_i32 = arith.constant 0 : i32
    %c0_i32_0 = arith.constant 0 : i32
    return %arg0, %arg1, %c0_i32 : i32, i32, i32
  }
}

module attributes {stable_mosaic.version = 11 : i64} {
  func.func @conv_stats_kernel(%arg0: i32, %arg1: i32, %arg2: memref<1x144x32xbf16, #tpu.memory_space<vmem>>, %arg3: memref<2x32x128xbf16, #tpu.memory_space<vmem>>, %arg4: memref<1x128x128xbf16, #tpu.memory_space<vmem>>, %arg5: memref<1x1x8x128xf32, #tpu.memory_space<vmem>>) attributes {dimension_semantics = [#tpu.dimension_semantics<parallel>, #tpu.dimension_semantics<parallel>], iteration_bounds = array<i64: 2, 1>, scalar_prefetch = 0 : i64, scratch_operands = 0 : i64, tpu.core_type = #tpu.core_type<tc>, window_params = [{transform_indices = @transform_0, window_bounds = array<i64: 1, 144, 32>}, {pipeline_mode = #tpu.pipeline_mode<synchronous>, transform_indices = @transform_1, window_bounds = array<i64: 2, 32, 128>}, {transform_indices = @transform_2, window_bounds = array<i64: 1, 128, 128>}, {transform_indices = @transform_3, window_bounds = array<i64: 1, 1, 8, 128>}]} {
    %c128_i32 = arith.constant 128 : i32
    %0 = arith.muli %arg1, %c128_i32 : i32
    %cst = arith.constant 0.000000e+00 : f32
    %1 = vector.broadcast %cst : f32 to vector<128x128xf32>
    %c0_i32 = arith.constant 0 : i32
    %2 = arith.addi %0, %c0_i32 : i32
    %3 = tpu.assume_multiple %2, 16 : i32
    %c0 = arith.constant 0 : index
    %4 = arith.index_cast %3 : i32 to index
    %c0_0 = arith.constant 0 : index
    %5 = vector.load %arg2[%c0, %4, %c0_0] : memref<1x144x32xbf16, #tpu.memory_space<vmem>>, vector<1x128x32xbf16>
    %6 = vector.shape_cast %5 : vector<1x128x32xbf16> to vector<128x32xbf16>
    %c0_1 = arith.constant 0 : index
    %c0_2 = arith.constant 0 : index
    %c0_3 = arith.constant 0 : index
    %7 = vector.load %arg3[%c0_1, %c0_2, %c0_3] : memref<2x32x128xbf16, #tpu.memory_space<vmem>>, vector<1x32x128xbf16>
    %8 = vector.shape_cast %7 : vector<1x32x128xbf16> to vector<32x128xbf16>
    %cst_4 = arith.constant dense<0.000000e+00> : vector<128x128xf32>
    %9 = tpu.matmul %6, %8, %cst_4 {dimension_numbers = #tpu.dot_dimension_numbers<[1], [0], [0], [1], [0, 0, 1, 1], [], []>} : vector<128x32xbf16>, vector<32x128xbf16>, vector<128x128xf32> -> vector<128x128xf32>
    %10 = arith.addf %1, %9 : vector<128x128xf32>
    %c16_i32 = arith.constant 16 : i32
    %11 = arith.addi %0, %c16_i32 : i32
    %12 = tpu.assume_multiple %11, 16 : i32
    %c0_5 = arith.constant 0 : index
    %13 = arith.index_cast %12 : i32 to index
    %c0_6 = arith.constant 0 : index
    %14 = vector.load %arg2[%c0_5, %13, %c0_6] : memref<1x144x32xbf16, #tpu.memory_space<vmem>>, vector<1x128x32xbf16>
    %15 = vector.shape_cast %14 : vector<1x128x32xbf16> to vector<128x32xbf16>
    %c1 = arith.constant 1 : index
    %c0_7 = arith.constant 0 : index
    %c0_8 = arith.constant 0 : index
    %16 = vector.load %arg3[%c1, %c0_7, %c0_8] : memref<2x32x128xbf16, #tpu.memory_space<vmem>>, vector<1x32x128xbf16>
    %17 = vector.shape_cast %16 : vector<1x32x128xbf16> to vector<32x128xbf16>
    %cst_9 = arith.constant dense<0.000000e+00> : vector<128x128xf32>
    %18 = tpu.matmul %15, %17, %cst_9 {dimension_numbers = #tpu.dot_dimension_numbers<[1], [0], [0], [1], [0, 0, 1, 1], [], []>} : vector<128x32xbf16>, vector<32x128xbf16>, vector<128x128xf32> -> vector<128x128xf32>
    %19 = arith.addf %10, %18 : vector<128x128xf32>
    %20 = arith.truncf %19 : vector<128x128xf32> to vector<128x128xbf16>
    %c0_10 = arith.constant 0 : index
    %c0_11 = arith.constant 0 : index
    %c0_12 = arith.constant 0 : index
    %21 = vector.load %arg4[%c0_10, %c0_11, %c0_12] : memref<1x128x128xbf16, #tpu.memory_space<vmem>>, vector<1x128x128xbf16>
    %22 = vector.shape_cast %21 : vector<1x128x128xbf16> to vector<128x128xbf16>
    %23 = vector.shape_cast %20 : vector<128x128xbf16> to vector<1x128x128xbf16>
    tpu.vector_store %arg4[%c0_10, %c0_11, %c0_12], %23 {strides = array<i32>} : memref<1x128x128xbf16, #tpu.memory_space<vmem>>, vector<1x128x128xbf16>,
    %24 = tpu.iota {dimensions = array<i32: 0>} : vector<128x1xi32>
    %25 = vector.broadcast %0 : i32 to vector<128x1xi32>
    %26 = arith.addi %25, %24 : vector<128x1xi32>
    %c128_i32_13 = arith.constant 128 : i32
    %27 = vector.broadcast %c128_i32_13 : i32 to vector<128x1xi32>
    %28 = arith.cmpi slt, %26, %27 : vector<128x1xi32>
    %cst_14 = arith.constant 0.000000e+00 : f32
    %29 = vector.shape_cast %28 : vector<128x1xi1> to vector<128x1xi1>
    %30 = vector.broadcast %29 : vector<128x1xi1> to vector<128x128xi1>
    %31 = vector.broadcast %cst_14 : f32 to vector<128x128xf32>
    %32 = arith.select %30, %19, %31 : vector<128x128xi1>, vector<128x128xf32>
    %cst_15 = arith.constant dense<0.000000e+00> : vector<128xf32>
    %33 = vector.multi_reduction <add>, %32, %cst_15 [0] : vector<128x128xf32> to vector<128xf32>
    %34 = vector.shape_cast %33 : vector<128xf32> to vector<1x128xf32>
    %c0_16 = arith.constant 0 : index
    %c0_17 = arith.constant 0 : index
    %c0_18 = arith.constant 0 : index
    %c0_19 = arith.constant 0 : index
    %35 = vector.load %arg5[%c0_16, %c0_17, %c0_18, %c0_19] : memref<1x1x8x128xf32, #tpu.memory_space<vmem>>, vector<1x1x1x128xf32>
    %36 = vector.shape_cast %35 : vector<1x1x1x128xf32> to vector<1x128xf32>
    %37 = vector.shape_cast %34 : vector<1x128xf32> to vector<1x1x1x128xf32>
    tpu.vector_store %arg5[%c0_16, %c0_17, %c0_18, %c0_19], %37 {strides = array<i32>} : memref<1x1x8x128xf32, #tpu.memory_space<vmem>>, vector<1x1x1x128xf32>,
    %38 = arith.mulf %32, %32 : vector<128x128xf32>
    %cst_20 = arith.constant dense<0.000000e+00> : vector<128xf32>
    %39 = vector.multi_reduction <add>, %38, %cst_20 [0] : vector<128x128xf32> to vector<128xf32>
    %40 = vector.shape_cast %39 : vector<128xf32> to vector<1x128xf32>
    %c0_21 = arith.constant 0 : index
    %c0_22 = arith.constant 0 : index
    %c1_23 = arith.constant 1 : index
    %c0_24 = arith.constant 0 : index
    %41 = vector.load %arg5[%c0_21, %c0_22, %c1_23, %c0_24] : memref<1x1x8x128xf32, #tpu.memory_space<vmem>>, vector<1x1x1x128xf32>
    %42 = vector.shape_cast %41 : vector<1x1x1x128xf32> to vector<1x128xf32>
    %43 = vector.shape_cast %40 : vector<1x128xf32> to vector<1x1x1x128xf32>
    tpu.vector_store %arg5[%c0_21, %c0_22, %c1_23, %c0_24], %43 {strides = array<i32>} : memref<1x1x8x128xf32, #tpu.memory_space<vmem>>, vector<1x1x1x128xf32>,
    return
  }
  func.func @transform_0(%arg0: i32, %arg1: i32) -> (i32, i32, i32) {
    %c0_i32 = arith.constant 0 : i32
    %c0_i32_0 = arith.constant 0 : i32
    %c0_i32_1 = arith.constant 0 : i32
    return %arg0, %c0_i32, %c0_i32_0 : i32, i32, i32
  }
  func.func @transform_1(%arg0: i32, %arg1: i32) -> (i32, i32, i32) {
    %c0_i32 = arith.constant 0 : i32
    %c0_i32_0 = arith.constant 0 : i32
    %c0_i32_1 = arith.constant 0 : i32
    %c0_i32_2 = arith.constant 0 : i32
    return %c0_i32, %c0_i32_0, %c0_i32_1 : i32, i32, i32
  }
  func.func @transform_2(%arg0: i32, %arg1: i32) -> (i32, i32, i32) {
    %c0_i32 = arith.constant 0 : i32
    %c0_i32_0 = arith.constant 0 : i32
    return %arg0, %arg1, %c0_i32 : i32, i32, i32
  }
  func.func @transform_3(%arg0: i32, %arg1: i32) -> (i32, i32, i32, i32) {
    %c0_i32 = arith.constant 0 : i32
    %c0_i32_0 = arith.constant 0 : i32
    %c0_i32_1 = arith.constant 0 : i32
    return %arg0, %arg1, %c0_i32, %c0_i32_0 : i32, i32, i32, i32
  }
}

</mosaic_0001>

<bundles_post_ra>
// kernel: cnn_block_forward.3
= control target key start
LH: loop header
LB: loop body
LE: loop exit
PB: predicated region body
PF: predicated region fallthrough
CT: control target
= control target key end

     0   :  { %s561_s12 = smov 0   ;;  %s563_s13 = smov 0   ;;  %s668_s0 = inlined_call_operand.vmem [shape: bf16[2,128,128], index: 0, kind: input, shape index: {}]   ;;  %s669_s1 = inlined_call_operand.vmem [shape: f32[1,128], index: 1, kind: input, shape index: {}]   ;;  %s670_s2 = inlined_call_operand.vmem [shape: f32[1,128], index: 2, kind: input, shape index: {}]   ;;  %s671_s3 = inlined_call_operand.vmem [shape: f32[2,128,128], index: 3, kind: output, shape index: {}]  }
   0x1   :  { %s565_s14 = smov 0  }
   0x2 LB: > { %s25_s15 = sadd.s32 1, %s535_s13  ;;  %p443_p0 = scmp.ge.s32.totalorder %s539_s14, 1  ;;  %s539_s14 = sphi %s565_s14, %s13_s14   ;;  %s535_s13 = sphi %s563_s13, %s673_s13   ;;  %s531_s12 = sphi %s561_s12, %s672_s12  }
   0x3   : > { %p27_p1 = scmp.ge.s32.totalorder %s25_s15, 2  ;;  %p158_p2 = scmp.lt.s32.totalorder %s539_s14, 3 }
   0x5   : > { %s675_s15 = smov (%p27_p1, %s25_s15), 0  ;;  %p159_p3 = pnand %p443_p0, %p158_p2 }
   0x6   : > { %p191_p4 = scmp.lt.s32.totalorder (!%p159_p3), %s531_s12, 1 }
   0x7   : > { %162 = sbr.rel (%p159_p3) target bundleno = 45 (0x2d), region = 32 }
   0xc   : > { %s677_s12 = smov (!%p191_p4, %s531_s12), 1  ;;  %v590_v0 = vld [vmem:[%s669_s1] ss:$0 sm:$0xff] }
   0xd   : > { %s452_s16 = sshll.u32 %s677_s12, 6  ;;  %v599_v9 = vld [vmem:[%s670_s2] ss:$0 sm:$0xff]  ;;  %s453_s24 = sshll.u32 %s677_s12, 7 }
   0xe   : > { %s585_s19 = scalar_lea.vmem %s668_s0, %s452_s16  ;;  %s621_s27 = scalar_lea.vmem %s671_s3, %s453_s24 }
   0xf   : > { %v455_v1 = vld [vmem:[%s585_s19] sm:$0xff]   ;;  %v486_v2 = vld [vmem:[%s585_s19 + $0x8] sm:$0xff]   ;;  %v487_v3 = vld [vmem:[%s585_s19 + $0x10] sm:$0xff]  }
  0x10   : > { %v456_v4 = vunpack.c.l.bf16 %v455_v1  ;;  %v457_v5 = vunpack.c.h.bf16 %v455_v1  ;;  %v460_v6 = vunpack.c.l.bf16 %v486_v2  ;;  %v461_v7 = vunpack.c.h.bf16 %v486_v2  ;;  %v488_v8 = vld [vmem:[%s585_s19 + $0x18] sm:$0xff]   ;;  %v489_v37 = vld [vmem:[%s585_s19 + $0x20] sm:$0xff]   ;;  %v490_v41 = vld [vmem:[%s585_s19 + $0x28] sm:$0xff]  }
  0x11   : > { %v464_v10 = vunpack.c.l.bf16 %v487_v3  ;;  %v465_v11 = vunpack.c.h.bf16 %v487_v3  ;;  %v468_v12 = vunpack.c.l.bf16 %v488_v8  ;;  %v469_v13 = vunpack.c.h.bf16 %v488_v8  ;;  %v491_v42 = vld [vmem:[%s585_s19 + $0x30] sm:$0xff]   ;;  %v492_v49 = vld [vmem:[%s585_s19 + $0x38] sm:$0xff]  }
  0x12   : > { %v249_v14 = vmul.f32 %v456_v4, %v590_v0  ;;  %v250_v15 = vmul.f32 %v457_v5, %v590_v0  ;;  %v251_v16 = vmul.f32 %v460_v6, %v590_v0  ;;  %v252_v17 = vmul.f32 %v461_v7, %v590_v0 }
  0x13   : > { %v253_v18 = vmul.f32 %v464_v10, %v590_v0  ;;  %v254_v19 = vmul.f32 %v465_v11, %v590_v0  ;;  %v255_v20 = vmul.f32 %v468_v12, %v590_v0  ;;  %v256_v21 = vmul.f32 %v469_v13, %v590_v0 }
  0x14   : > { %v272_v22 = vadd.f32 %v599_v9, %v249_v14  ;;  %v273_v23 = vadd.f32 %v599_v9, %v250_v15  ;;  %v274_v24 = vadd.f32 %v599_v9, %v251_v16  ;;  %v275_v25 = vadd.f32 %v599_v9, %v252_v17 }
  0x15   : > { %v276_v26 = vadd.f32 %v599_v9, %v253_v18  ;;  %v277_v27 = vadd.f32 %v599_v9, %v254_v19  ;;  %v278_v28 = vadd.f32 %v599_v9, %v255_v20  ;;  %v279_v29 = vadd.f32 %v599_v9, %v256_v21 }
  0x16   : > { %vm288_vm0 = vcmp.gt.f32.partialorder %v272_v22, 0.0  ;;  %v304_v30 = vmul.f32 0.2, %v272_v22  ;;  %vm289_vm1 = vcmp.gt.f32.partialorder %v273_v23, 0.0  ;;  %v305_v31 = vmul.f32 0.2, %v273_v23 }
  0x17   : > { %vm290_vm2 = vcmp.gt.f32.partialorder %v274_v24, 0.0  ;;  %v306_v32 = vmul.f32 0.2, %v274_v24  ;;  %vm291_vm3 = vcmp.gt.f32.partialorder %v275_v25, 0.0  ;;  %v307_v33 = vmul.f32 0.2, %v275_v25 }
  0x18   : > { %v320_v34 = vsel %vm288_vm0, %v272_v22, %v304_v30  ;;  %v321_v35 = vsel %vm289_vm1, %v273_v23, %v305_v31  ;;  %vm292_vm4 = vcmp.gt.f32.partialorder %v276_v26, 0.0  ;;  %v308_v36 = vmul.f32 0.2, %v276_v26 }
  0x19   : > { %336 = vst [vmem:[%s621_s27] sm:$0xff] %v320_v34  ;;  %337 = vst [vmem:[%s621_s27 + $0x8] sm:$0xff] %v321_v35  ;;  %v322_v38 = vsel %vm290_vm2, %v274_v24, %v306_v32  ;;  %v323_v39 = vsel %vm291_vm3, %v275_v25, %v307_v33  ;;  %vm293_vm5 = vcmp.gt.f32.partialorder %v277_v27, 0.0  ;;  %v309_v40 = vmul.f32 0.2, %v277_v27 }
  0x1a   : > { %338 = vst [vmem:[%s621_s27 + $0x10] sm:$0xff] %v322_v38  ;;  %339 = vst [vmem:[%s621_s27 + $0x18] sm:$0xff] %v323_v39  ;;  %v324_v43 = vsel %vm292_vm4, %v276_v26, %v308_v36  ;;  %vm294_vm6 = vcmp.gt.f32.partialorder %v278_v28, 0.0  ;;  %v310_v44 = vmul.f32 0.2, %v278_v28  ;;  %vm295_vm7 = vcmp.gt.f32.partialorder %v279_v29, 0.0 }
  0x1b   : > { %340 = vst [vmem:[%s621_s27 + $0x20] sm:$0xff] %v324_v43  ;;  %v325_v45 = vsel %vm293_vm5, %v277_v27, %v309_v40  ;;  %v311_v46 = vmul.f32 0.2, %v279_v29  ;;  %v472_v47 = vunpack.c.l.bf16 %v489_v37  ;;  %v473_v48 = vunpack.c.h.bf16 %v489_v37 }
  0x1c   : > { %341 = vst [vmem:[%s621_s27 + $0x28] sm:$0xff] %v325_v45  ;;  %v326_v50 = vsel %vm294_vm6, %v278_v28, %v310_v44  ;;  %v476_v51 = vunpack.c.l.bf16 %v490_v41  ;;  %v477_v52 = vunpack.c.h.bf16 %v490_v41  ;;  %v480_v53 = vunpack.c.l.bf16 %v491_v42 }
  0x1d   : > { %342 = vst [vmem:[%s621_s27 + $0x30] sm:$0xff] %v326_v50  ;;  %v327_v54 = vsel %vm295_vm7, %v279_v29, %v311_v46  ;;  %v257_v55 = vmul.f32 %v472_v47, %v590_v0  ;;  %v258_v56 = vmul.f32 %v473_v48, %v590_v0  ;;  %v481_v57 = vunpack.c.h.bf16 %v491_v42 }
  0x1e   : > { %343 = vst [vmem:[%s621_s27 + $0x38] sm:$0xff] %v327_v54  ;;  %v259_v58 = vmul.f32 %v476_v51, %v590_v0  ;;  %v260_v59 = vmul.f32 %v477_v52, %v590_v0  ;;  %v261_v60 = vmul.f32 %v480_v53, %v590_v0  ;;  %v484_v61 = vunpack.c.l.bf16 %v492_v49 }
  0x1f   : > { %v280_v62 = vadd.f32 %v599_v9, %v257_v55  ;;  %v281_v63 = vadd.f32 %v599_v9, %v258_v56  ;;  %v262_v1 = vmul.f32 %v481_v57, %v590_v0  ;;  %v485_v2 = vunpack.c.h.bf16 %v492_v49 }
  0x20   : > { %v282_v3 = vadd.f32 %v599_v9, %v259_v58  ;;  %v283_v4 = vadd.f32 %v599_v9, %v260_v59  ;;  %v284_v5 = vadd.f32 %v599_v9, %v261_v60  ;;  %v263_v6 = vmul.f32 %v484_v61, %v590_v0 }
  0x21   : > { %vm296_vm8 = vcmp.gt.f32.partialorder %v280_v62, 0.0  ;;  %v312_v7 = vmul.f32 0.2, %v280_v62  ;;  %vm297_vm9 = vcmp.gt.f32.partialorder %v281_v63, 0.0  ;;  %v313_v8 = vmul.f32 0.2, %v281_v63 }
  0x22   : > { %vm298_vm10 = vcmp.gt.f32.partialorder %v282_v3, 0.0  ;;  %v314_v10 = vmul.f32 0.2, %v282_v3  ;;  %vm299_vm11 = vcmp.gt.f32.partialorder %v283_v4, 0.0  ;;  %v315_v11 = vmul.f32 0.2, %v283_v4 }
  0x23   : > { %v328_v12 = vsel %vm296_vm8, %v280_v62, %v312_v7  ;;  %v329_v13 = vsel %vm297_vm9, %v281_v63, %v313_v8  ;;  %vm300_vm12 = vcmp.gt.f32.partialorder %v284_v5, 0.0  ;;  %v316_v14 = vmul.f32 0.2, %v284_v5 }
  0x24   : > { %344 = vst [vmem:[%s621_s27 + $0x40] sm:$0xff] %v328_v12  ;;  %345 = vst [vmem:[%s621_s27 + $0x48] sm:$0xff] %v329_v13  ;;  %v330_v15 = vsel %vm298_vm10, %v282_v3, %v314_v10  ;;  %v331_v16 = vsel %vm299_vm11, %v283_v4, %v315_v11  ;;  %v285_v17 = vadd.f32 %v599_v9, %v262_v1 }
  0x25   : > { %v286_v18 = vadd.f32 %v599_v9, %v263_v6  ;;  %346 = vst [vmem:[%s621_s27 + $0x50] sm:$0xff] %v330_v15  ;;  %347 = vst [vmem:[%s621_s27 + $0x58] sm:$0xff] %v331_v16  ;;  %v332_v19 = vsel %vm300_vm12, %v284_v5, %v316_v14  ;;  %v264_v20 = vmul.f32 %v485_v2, %v590_v0 }
  0x26   : > { %348 = vst [vmem:[%s621_s27 + $0x60] sm:$0xff] %v332_v19  ;;  %vm301_vm13 = vcmp.gt.f32.partialorder %v285_v17, 0.0  ;;  %v317_v21 = vmul.f32 0.2, %v285_v17 }
  0x27   : > { %vm302_vm14 = vcmp.gt.f32.partialorder %v286_v18, 0.0  ;;  %v318_v22 = vmul.f32 0.2, %v286_v18  ;;  %v287_v23 = vadd.f32 %v599_v9, %v264_v20 }
  0x28   : > { %v333_v24 = vsel %vm301_vm13, %v285_v17, %v317_v21 }
  0x29   : > { %v334_v25 = vsel %vm302_vm14, %v286_v18, %v318_v22  ;;  %349 = vst [vmem:[%s621_s27 + $0x68] sm:$0xff] %v333_v24  ;;  %vm303_vm15 = vcmp.gt.f32.partialorder %v287_v23, 0.0  ;;  %v319_v26 = vmul.f32 0.2, %v287_v23 }
  0x2a   : > { %350 = vst [vmem:[%s621_s27 + $0x70] sm:$0xff] %v334_v25 }
  0x2b   : > { %v335_v27 = vsel %vm303_vm15, %v287_v23, %v319_v26 }
  0x2c   : > { %351 = vst [vmem:[%s621_s27 + $0x78] sm:$0xff] %v335_v27 }
  0x2d PF: > { %s13_s14 = sadd.s32 1, %s539_s14   ;;  %s672_s12 = smov %s535_s13 }
  0x2e   : > { %p10_p5 = scmp.ge.s32.totalorder %s13_s14, 4   ;;  %s673_s13 = smov %s675_s15 }
  0x30   :  { %12 = sbr.rel (!%p10_p5) target bundleno = 2 (0x2), region = 62 }

// kernel: cnn_block_forward.2
= control target key start
LH: loop header
LB: loop body
LE: loop exit
PB: predicated region body
PF: predicated region fallthrough
CT: control target
= control target key end

     0   :  { %s1272_s12 = smov 0   ;;  %s1274_s13 = smov 0   ;;  %s1369_s0 = inlined_call_operand.vmem [shape: bf16[2,144,32], index: 0, kind: input, shape index: {}]   ;;  %s1370_s1 = inlined_call_operand.vmem [shape: bf16[2,32,128], index: 1, kind: input, shape index: {}]   ;;  %s1371_s2 = inlined_call_operand.vmem [shape: bf16[2,128,128], index: 2, kind: output, shape index: {0}]   ;;  %s1372_s3 = inlined_call_operand.vmem [shape: f32[2,1,8,128], index: 3, kind: output, shape index: {1}]  }
   0x1   :  { %s1276_s14 = smov 0  }
   0x2 LB: > { %s26_s15 = sadd.s32 1, %s1246_s13  ;;  %p980_p0 = scmp.ge.s32.totalorder %s1250_s14, 1  ;;  %s1250_s14 = sphi %s1276_s14, %s14_s14   ;;  %s1246_s13 = sphi %s1274_s13, %s1374_s13   ;;  %s1242_s12 = sphi %s1272_s12, %s1373_s12  }
   0x3   : > { %p28_p1 = scmp.ge.s32.totalorder %s26_s15, 2  ;;  %p156_p2 = scmp.lt.s32.totalorder %s1250_s14, 3 }
   0x5   : > { %s1376_s15 = smov (%p28_p1, %s26_s15), 0  ;;  %p157_p3 = pnand %p980_p0, %p156_p2 }
   0x6   : > { %p191_p4 = scmp.lt.s32.totalorder (!%p157_p3), %s1242_s12, 1 }
   0x7   : > { %160 = sbr.rel (%p157_p3) target bundleno = 267 (0x10b), region = 28 }
   0xc   : > { %v1208_v0 = vld [vmem:[%s1370_s1 + $0x18] sm:$0xff]   ;;  %v1209_v1 = vld [vmem:[%s1370_s1 + $0x8] sm:$0xff]   ;;  %v1210_v2 = vld [vmem:[%s1370_s1 + $0x10] sm:$0xff]   ;;  %s1378_s12 = smov (!%p191_p4, %s1242_s12), 1  ;;  %vm317_vm0 = vcmask 261120  }
   0xd   : > { %1143 = vmatprep.subr.bf16.mxu0 %v1208_v0  ;;  %1163 = vmatprep.subr.bf16.mxu1 %v1209_v1  ;;  %v1211_v3 = vld [vmem:[%s1370_s1] sm:$0xff]   ;;  %s1183_s24 = smul.u32 72, %s1378_s12  ;;  %s1059_s28 = sshll.u32 %s1378_s12, 6 }
   0xe   : > { %1144 = vmatpush3.bf16.msra.mxu0 %v1208_v0  ;;  %1164 = vmatpush3.bf16.msra.mxu1 %v1209_v1  ;;  %s1346_s4 = scalar_lea.vmem %s1371_s2, %s1059_s28  ;;  %s984_s5 = sshll.u32 %s1378_s12, 3 }
   0xf   : > { %1145 = vmatprep.subr.bf16.mxu0 %v1210_v2  ;;  %1165 = vmatprep.subr.bf16.mxu1 %v1211_v3  ;;  %s1308_s27 = scalar_lea.vmem %s1369_s0, %s1183_s24  ;;  %s212_s8 = scalar_lea.vmem %s1372_s3, %s984_s5 }
  0x10   : > { %v1212_v4 = vld [vmem:[%s1308_s27 + $0x8] sm:$0xff]   ;;  %v1213_v5 = vld [vmem:[%s1308_s27] sm:$0xff]   ;;  %v1214_v6 = vld [vmem:[%s1308_s27 + $0x10] sm:$0xff]  }
  0x11   : > { %1147 = vmatprep.mubr.msk.bf16.mxu0 %vm317_vm0, %v1212_v4  ;;  %1167 = vmatprep.mubr.msk.bf16.mxu1 %vm317_vm0, %v1213_v5  ;;  %v1215_v7 = vld [vmem:[%s1308_s27 + $0x8] sm:$0xff]   ;;  %v1216_v8 = vld [vmem:[%s1308_s27 + $0x18] sm:$0xff]   ;;  %v1217_v9 = vld [vmem:[%s1308_s27 + $0x10] sm:$0xff]  }
  0x12   : > { %1146 = vmatpush3.bf16.msra.mxu0 %v1210_v2  ;;  %1166 = vmatpush3.bf16.msra.mxu1 %v1211_v3  ;;  %v1218_v10 = vld [vmem:[%s1308_s27 + $0x20] sm:$0xff]   ;;  %v1219_v11 = vld [vmem:[%s1308_s27 + $0x18] sm:$0xff]   ;;  %v1220_v12 = vld [vmem:[%s1308_s27 + $0x28] sm:$0xff]  }
  0x13   : > { %v1221_v13 = vld [vmem:[%s1308_s27 + $0x20] sm:$0xff]   ;;  %v1222_v14 = vld [vmem:[%s1308_s27 + $0x30] sm:$0xff]   ;;  %v1223_v15 = vld [vmem:[%s1308_s27 + $0x28] sm:$0xff]  }
  0x14   : > { %v1224_v16 = vld [vmem:[%s1308_s27 + $0x38] sm:$0xff]   ;;  %v1225_v17 = vld [vmem:[%s1308_s27 + $0x30] sm:$0xff]   ;;  %v1226_v18 = vld [vmem:[%s1308_s27 + $0x40] sm:$0xff]  }
  0x15   : > { %1148 = vmatmul.mubr.msk.bf16.vlgmr.msra.gmra.mxu0 %vm317_vm0, %v1214_v6  ;;  %1168 = vmatmul.mubr.msk.bf16.vlgmr.msra.gmra.mxu1 %vm317_vm0, %v1215_v7  ;;  %v1227_v19 = vld [vmem:[%s1308_s27 + $0x38] sm:$0xff]  }
  0x16   : > { %1151 = vmatprep.mubr.msk.bf16.mxu0 %vm317_vm0, %v1216_v8  ;;  %1171 = vmatprep.mubr.msk.bf16.mxu1 %vm317_vm0, %v1217_v9 }
  0x1d   : > { %1152 = vmatmul.mubr.msk.bf16.gmra.mxu0 %vm317_vm0, %v1218_v10  ;;  %1172 = vmatmul.mubr.msk.bf16.gmra.mxu1 %vm317_vm0, %v1219_v11 }
  0x1e   : > { %1155 = vmatprep.mubr.msk.bf16.mxu0 %vm317_vm0, %v1220_v12  ;;  %1175 = vmatprep.mubr.msk.bf16.mxu1 %vm317_vm0, %v1221_v13 }
  0x25   : > { %1156 = vmatmul.mubr.msk.bf16.gmra.mxu0 %vm317_vm0, %v1222_v14  ;;  %1176 = vmatmul.mubr.msk.bf16.gmra.mxu1 %vm317_vm0, %v1223_v15 }
  0x26   : > { %1159 = vmatprep.mubr.msk.bf16.mxu0 %vm317_vm0, %v1224_v16  ;;  %1179 = vmatprep.mubr.msk.bf16.mxu1 %vm317_vm0, %v1225_v17 }
  0x2d   : > { %1160 = vmatmul.mubr.msk.bf16.gmra.mxu0 %vm317_vm0, %v1226_v18  ;;  %1180 = vmatmul.mubr.msk.bf16.gmra.mxu1 %vm317_vm0, %v1227_v19 }
  0xd5   : > { %v1149_v20 = vpop.f32.mrf.mxu0  ;;  %v1169_v21 = vpop.f32.mrf.mxu1 }
  0xd6   : > { %v558_v26 = vadd.f32 %v1169_v21, %v1149_v20 }
  0xd7   : > { %v376_v22 = vpop.f32.mrf.mxu0  ;;  %v549_v23 = vpop.f32.mrf.mxu1 }
  0xd8   : > { %v550_v27 = vadd.f32 %v549_v23, %v376_v22  ;;  %v814_v41 = vmul.f32 %v558_v26, %v558_v26 }
  0xd9   : > { %v1150_v24 = vpop.f32.mrf.mxu0  ;;  %v1170_v25 = vpop.f32.mrf.mxu1 }
  0xda   : > { %v561_v28 = vadd.f32 %v1170_v25, %v1150_v24  ;;  %v812_v35 = vmul.f32 %v550_v27, %v550_v27 }
  0xdb   : > { %v379_v29 = vpop.f32.mrf.mxu0  ;;  %v552_v30 = vpop.f32.mrf.mxu1 }
  0xdc   : > { %v1084_v31 = vpack.c.bf16 %v561_v28, %v558_v26  ;;  %v553_v32 = vadd.f32 %v552_v30, %v379_v29  ;;  %v815_v46 = vmul.f32 %v561_v28, %v561_v28 }
  0xdd   : > { %v1153_v33 = vpop.f32.mrf.mxu0  ;;  %v1173_v34 = vpop.f32.mrf.mxu1 }
  0xde   : > { %1116 = vst [vmem:[%s1346_s4 + $0x8] sm:$0xff] %v1084_v31   ;;  %v1079_v36 = vpack.c.bf16 %v553_v32, %v550_v27  ;;  %v790_v37 = vadd.f32 %v553_v32, %v550_v27  ;;  %v813_v38 = vmul.f32 %v553_v32, %v553_v32  ;;  %v574_v49 = vadd.f32 %v1173_v34, %v1153_v33 }
  0xdf   : > { %v392_v39 = vpop.f32.mrf.mxu0  ;;  %v565_v40 = vpop.f32.mrf.mxu1 }
  0xe0   : > { %1080 = vst [vmem:[%s1346_s4] sm:$0xff] %v1079_v36   ;;  %v791_v42 = vadd.f32 %v790_v37, %v558_v26  ;;  %v828_v43 = vadd.f32 %v813_v38, %v812_v35  ;;  %v566_v44 = vadd.f32 %v565_v40, %v392_v39  ;;  %v818_v4 = vmul.f32 %v574_v49, %v574_v49 }
  0xe1   : > { %v1154_v45 = vpop.f32.mrf.mxu0  ;;  %v1174_v47 = vpop.f32.mrf.mxu1 }
  0xe2   : > { %v829_v48 = vadd.f32 %v828_v43, %v814_v41  ;;  %v792_v50 = vadd.f32 %v791_v42, %v561_v28  ;;  %v577_v51 = vadd.f32 %v1174_v47, %v1154_v45  ;;  %v816_v55 = vmul.f32 %v566_v44, %v566_v44 }
  0xe3   : > { %v395_v52 = vpop.f32.mrf.mxu0  ;;  %v568_v53 = vpop.f32.mrf.mxu1 }
  0xe4   : > { %v793_v54 = vadd.f32 %v792_v50, %v566_v44  ;;  %v830_v56 = vadd.f32 %v829_v48, %v815_v46  ;;  %v1094_v57 = vpack.c.bf16 %v577_v51, %v574_v49  ;;  %v569_v59 = vadd.f32 %v568_v53, %v395_v52 }
  0xe5   : > { %v1157_v58 = vpop.f32.mrf.mxu0  ;;  %v1177_v60 = vpop.f32.mrf.mxu1  ;;  %v819_v12 = vmul.f32 %v577_v51, %v577_v51 }
  0xe6   : > { %v831_v61 = vadd.f32 %v830_v56, %v816_v55  ;;  %1118 = vst [vmem:[%s1346_s4 + $0x18] sm:$0xff] %v1094_v57   ;;  %v1089_v63 = vpack.c.bf16 %v569_v59, %v566_v44  ;;  %v794_v0 = vadd.f32 %v793_v54, %v569_v59  ;;  %v817_v1 = vmul.f32 %v569_v59, %v569_v59 }
  0xe7   : > { %v408_v62 = vpop.f32.mrf.mxu0  ;;  %v581_v2 = vpop.f32.mrf.mxu1  ;;  %v590_v9 = vadd.f32 %v1177_v60, %v1157_v58 }
  0xe8   : > { %1117 = vst [vmem:[%s1346_s4 + $0x10] sm:$0xff] %v1089_v63   ;;  %v795_v5 = vadd.f32 %v794_v0, %v574_v49  ;;  %v832_v6 = vadd.f32 %v831_v61, %v817_v1  ;;  %v582_v7 = vadd.f32 %v581_v2, %v408_v62 }
  0xe9   : > { %v1158_v3 = vpop.f32.mrf.mxu0  ;;  %v1178_v8 = vpop.f32.mrf.mxu1  ;;  %v822_v30 = vmul.f32 %v590_v9, %v590_v9 }
  0xea   : > { %v593_v10 = vadd.f32 %v1178_v8, %v1158_v3  ;;  %v833_v13 = vadd.f32 %v832_v6, %v818_v4  ;;  %v796_v14 = vadd.f32 %v795_v5, %v577_v51  ;;  %v820_v20 = vmul.f32 %v582_v7, %v582_v7 }
  0xeb   : > { %v411_v11 = vpop.f32.mrf.mxu0  ;;  %v584_v15 = vpop.f32.mrf.mxu1 }
  0xec   : > { %v1104_v16 = vpack.c.bf16 %v593_v10, %v590_v9  ;;  %v585_v17 = vadd.f32 %v584_v15, %v411_v11  ;;  %v797_v19 = vadd.f32 %v796_v14, %v582_v7  ;;  %v834_v21 = vadd.f32 %v833_v13, %v819_v12 }
  0xed   : > { %v1161_v18 = vpop.f32.mrf.mxu0  ;;  %v1181_v22 = vpop.f32.mrf.mxu1  ;;  %v823_v38 = vmul.f32 %v593_v10, %v593_v10 }
  0xee   : > { %1120 = vst [vmem:[%s1346_s4 + $0x28] sm:$0xff] %v1104_v16   ;;  %v1099_v23 = vpack.c.bf16 %v585_v17, %v582_v7  ;;  %v821_v24 = vmul.f32 %v585_v17, %v585_v17  ;;  %v835_v26 = vadd.f32 %v834_v21, %v820_v20  ;;  %v798_v27 = vadd.f32 %v797_v19, %v585_v17 }
  0xef   : > { %v424_v25 = vpop.f32.mrf.mxu0  ;;  %v597_v28 = vpop.f32.mrf.mxu1  ;;  %v606_v35 = vadd.f32 %v1181_v22, %v1161_v18 }
  0xf0   : > { %1119 = vst [vmem:[%s1346_s4 + $0x20] sm:$0xff] %v1099_v23   ;;  %v799_v31 = vadd.f32 %v798_v27, %v590_v9  ;;  %v836_v32 = vadd.f32 %v835_v26, %v821_v24  ;;  %v598_v33 = vadd.f32 %v597_v28, %v424_v25 }
  0xf1   : > { %v1162_v29 = vpop.f32.mrf.mxu0  ;;  %v1182_v34 = vpop.f32.mrf.mxu1  ;;  %v826_v51 = vmul.f32 %v606_v35, %v606_v35 }
  0xf2   : > { %v609_v36 = vadd.f32 %v1182_v34, %v1162_v29  ;;  %v837_v39 = vadd.f32 %v836_v32, %v822_v30  ;;  %v800_v40 = vadd.f32 %v799_v31, %v593_v10  ;;  %v824_v45 = vmul.f32 %v598_v33, %v598_v33 }
  0xf3   : > { %v427_v37 = vpop.f32.mrf.mxu0  ;;  %v600_v41 = vpop.f32.mrf.mxu1 }
  0xf4   : > { %v1114_v42 = vpack.c.bf16 %v609_v36, %v606_v35  ;;  %v601_v43 = vadd.f32 %v600_v41, %v427_v37  ;;  %v801_v44 = vadd.f32 %v800_v40, %v598_v33  ;;  %v838_v46 = vadd.f32 %v837_v39, %v823_v38 }
  0xf5   : > { %v827_v54 = vmul.f32 %v609_v36, %v609_v36 }
  0xf6   : > { %1122 = vst [vmem:[%s1346_s4 + $0x38] sm:$0xff] %v1114_v42   ;;  %v1109_v47 = vpack.c.bf16 %v601_v43, %v598_v33  ;;  %v825_v48 = vmul.f32 %v601_v43, %v601_v43  ;;  %v839_v49 = vadd.f32 %v838_v46, %v824_v45  ;;  %v802_v50 = vadd.f32 %v801_v44, %v601_v43 }
  0xf8   : > { %1121 = vst [vmem:[%s1346_s4 + $0x30] sm:$0xff] %v1109_v47   ;;  %v803_v52 = vadd.f32 %v802_v50, %v606_v35  ;;  %v840_v53 = vadd.f32 %v839_v49, %v825_v48 }
  0xfa   : > { %v804_v55 = vadd.f32 %v803_v52, %v609_v36  ;;  %v841_v56 = vadd.f32 %v840_v53, %v826_v51 }
  0xfc   : > { %v805_v57 = vrot.slane %v804_v55, 4  ;;  %v842_v58 = vadd.f32 %v841_v56, %v827_v54 }
  0xfe   : > { %v806_v59 = vadd.f32 %v805_v57, %v804_v55  ;;  %v843_v60 = vrot.slane %v842_v58, 4 }
 0x100   : > { %v807_v61 = vrot.slane %v806_v59, 2  ;;  %v844_v62 = vadd.f32 %v843_v60, %v842_v58 }
 0x102   : > { %v808_v63 = vadd.f32 %v807_v61, %v806_v59  ;;  %v845_v0 = vrot.slane %v844_v62, 2 }
 0x104   : > { %v809_v1 = vrot.slane %v808_v63, 1  ;;  %v846_v2 = vadd.f32 %v845_v0, %v844_v62 }
 0x106   : > { %v810_v3 = vadd.f32 %v809_v1, %v808_v63  ;;  %v847_v4 = vrot.slane %v846_v2, 1 }
 0x108   : > { %811 = vst [vmem:[%s212_s8] sm:$0x1] %v810_v3  ;;  %v848_v5 = vadd.f32 %v847_v4, %v846_v2 }
 0x10a   : > { %849 = vst [vmem:[%s212_s8 + $0x1] sm:$0x1] %v848_v5 }
 0x10b PF: > { %s14_s14 = sadd.s32 1, %s1250_s14   ;;  %s1373_s12 = smov %s1246_s13 }
 0x10c   : > { %p11_p5 = scmp.ge.s32.totalorder %s14_s14, 4   ;;  %s1374_s13 = smov %s1376_s15 }
 0x10e   :  { %13 = sbr.rel (!%p11_p5) target bundleno = 2 (0x2), region = 73 }

</bundles_post_ra>
